<compile_context>
chip_gen: v5e
topology: v5e:2x2
jax: 0.10.0
libtpu: 0.0.40
codegen_flags: <defaults>
</compile_context>

<pallas_src>
import jax
import jax.numpy as jnp
from jax.experimental import pallas as pl
from jax.experimental.pallas import tpu as pltpu


def _round_up(v, m):
    return ((v + m - 1) // m) * m


def _vmem_budget_bytes():
    cap = None
    try:
        info = pltpu.get_tpu_info()
        cap = getattr(info, "vmem_capacity_bytes", None)
    except Exception:
        cap = None
    if not cap:
        cap = 64 * 2**20  # conservative fallback: v7x physical VMEM per TensorCore
    # Leave ~20% headroom for Mosaic-internal scratch / pipeline slack.
    return (int(cap) * 4) // 5


def rope_kernel(x_ref, rot_ref, posr_ref, o_ref):
    # x_ref:    (TM, Dp) row tile of the input (original dtype; cast here, not in wrapper)
    # rot_ref:  (Dp, Dp) rotation matrix; constant block index -> stays resident in VMEM
    # posr_ref: (TM, Dp) f32 rows of pos_emb @ R matching this tile's sequence positions
    # o_ref:    (TM, Dp) output tile, written directly in the input dtype
    x = x_ref[...].astype(rot_ref.dtype)
    acc = jnp.dot(x, rot_ref[...], preferred_element_type=jnp.float32)
    o_ref[...] = (acc + posr_ref[...]).astype(o_ref.dtype)


def rotary_positional_embedding(x, positional_embedding, rotation_matrix,
                                *, row_tile=None, compute_dtype=jnp.float32):
    """Matches the PyTorch forward: out = (x + pos_emb[:S]) @ rotation_matrix."""
    B, S, D = x.shape
    out_dtype = x.dtype
    Dp = _round_up(D, 128)  # lane-dense last dim -> unmasked vector stores

    x_item = jnp.dtype(x.dtype).itemsize
    out_item = jnp.dtype(out_dtype).itemsize
    comp_item = jnp.dtype(compute_dtype).itemsize

    budget = _vmem_budget_bytes()

    def needed_bytes(tm):
        return (2 * tm * Dp * x_item          # x tiles (double-buffered)
                + 2 * tm * Dp * 4             # posR tiles (f32)
                + 2 * tm * Dp * out_item      # output tiles
                + 2 * Dp * Dp * comp_item     # resident rotation matrix (2 bufs)
                + (2 << 20))                  # Mosaic-internal margin

    if needed_bytes(8) > budget:
        # Rotation matrix alone does not fit the per-core VMEM budget.
        # TODO(synk): add a K-tiled (accumulator + pl.when) Pallas path for very large d_model.
        y = jnp.matmul(x.astype(jnp.float32) + positional_embedding[:S].astype(jnp.float32),
                       rotation_matrix.astype(jnp.float32))
        return y.astype(out_dtype)

    # posR = pos_emb[:S] @ R precomputed once (linearity: (x + p) @ R == x @ R + p @ R).
    posR = jnp.dot(positional_embedding[:S].astype(jnp.float32),
                   rotation_matrix.astype(jnp.float32),
                   preferred_element_type=jnp.float32)          # (S, D) f32
    if Dp != D:
        posR = jnp.pad(posR, ((0, 0), (0, Dp - D)))
        rot = jnp.pad(rotation_matrix, ((0, Dp - D), (0, Dp - D)))
    else:
        rot = rotation_matrix
    rot = rot.astype(compute_dtype)

    def pick_tile(rows_cap):
        tm = row_tile if row_tile is not None else 1024
        tm = max(8, _round_up(min(tm, rows_cap), 8))
        while tm > 8 and needed_bytes(tm) > budget:
            tm = max(8, _round_up(tm // 2, 8))
        return tm

    small_s = _round_up(S, 8) < 64  # decode-shaped: per-batch row tiles would be tiny

    if small_s:
        # ---- Flattened-row path: all B*S rows share one row axis; per-row posR. ----
        Mrows = B * S
        tm = pick_tile(_round_up(Mrows, 8))
        Mp = _round_up(Mrows, tm)
        xw = x.reshape(Mrows, D)
        if Mp != Mrows or Dp != D:
            xw = jnp.pad(xw, ((0, Mp - Mrows), (0, Dp - D)))
        posr = jnp.broadcast_to(posR[None], (B, S, Dp)).reshape(Mrows, Dp)
        if Mp != Mrows:
            posr = jnp.pad(posr, ((0, Mp - Mrows), (0, 0)))
        grid = (Mp // tm,)
        in_specs = [
            pl.BlockSpec((tm, Dp), lambda i: (i, 0)),        # x row tile
            pl.BlockSpec((Dp, Dp), lambda i: (0, 0)),        # R (resident)
            pl.BlockSpec((tm, Dp), lambda i: (i, 0)),        # posR row tile
        ]
        out_specs = pl.BlockSpec((tm, Dp), lambda i: (i, 0))
        out_shape = jax.ShapeDtypeStruct((Mp, Dp), out_dtype)
        dim_sem = ("parallel",)
        flops = 2 * Mp * Dp * Dp
        bytes_accessed = (Mp * Dp * x_item + Dp * Dp * comp_item
                          + Mp * Dp * 4 + Mp * Dp * out_item)
    else:
        # ---- (seq_block, batch) grid, batch innermost: posR block index unchanged
        #      across consecutive steps -> its DMA is skipped (de-duplicated). ----
        tm = pick_tile(_round_up(S, 8))
        Sp = _round_up(S, tm)
        n_seq = Sp // tm
        assert n_seq * tm == Sp  # row tiles never straddle batch boundaries
        xw = x
        if Sp != S or Dp != D:
            xw = jnp.pad(x, ((0, 0), (0, Sp - S), (0, Dp - D)))
        posr = posR
        if Sp != S:
            posr = jnp.pad(posr, ((0, Sp - S), (0, 0)))
        grid = (n_seq, B)
        in_specs = [
            pl.BlockSpec((None, tm, Dp), lambda i, b: (b, i, 0)),  # x row tile
            pl.BlockSpec((Dp, Dp), lambda i, b: (0, 0)),           # R (resident)
            pl.BlockSpec((tm, Dp), lambda i, b: (i, 0)),           # posR: const over b
        ]
        out_specs = pl.BlockSpec((None, tm, Dp), lambda i, b: (b, i, 0))
        out_shape = jax.ShapeDtypeStruct((B, Sp, Dp), out_dtype)
        # seq axis "parallel" (megacore split on v7x); batch "arbitrary" so the
        # consecutive-same-block revisit of posR is preserved within each core.
        dim_sem = ("parallel", "arbitrary")
        flops = 2 * B * Sp * Dp * Dp
        bytes_accessed = (B * Sp * Dp * x_item + Dp * Dp * comp_item
                          + Sp * Dp * 4 + B * Sp * Dp * out_item)

    needed = needed_bytes(tm)
    vmem_limit = int(min(needed, budget)) if needed > (16 << 20) else None

    cost = pl.CostEstimate(flops=int(flops), transcendentals=0,
                           bytes_accessed=int(bytes_accessed))

    out = pl.pallas_call(
        rope_kernel,
        out_shape=out_shape,
        grid_spec=pltpu.PrefetchScalarGridSpec(
            num_scalar_prefetch=0,
            grid=grid,
            in_specs=in_specs,
            out_specs=out_specs),
        compiler_params=pltpu.CompilerParams(
            dimension_semantics=dim_sem,
            vmem_limit_bytes=vmem_limit),
        cost_estimate=cost,
    )(xw, rot, posr)

    if small_s:
        out = out[:B * S].reshape(B, S, Dp)
    else:
        out = out[:, :S, :]
    return out[..., :D]


def make_params(d_model, max_seq_len=5000):
    # Deterministic parameter construction mirroring the PyTorch __init__.
    i = jnp.arange(d_model, dtype=jnp.float32)[:, None]
    j = jnp.arange(d_model, dtype=jnp.float32)[None, :]
    rotation_matrix = jnp.cos(i * j * 0.01)                       # (D, D)
    position = jnp.arange(max_seq_len, dtype=jnp.float32)[:, None]
    div_term = jnp.arange(d_model, dtype=jnp.float32)
    positional_embedding = jnp.cos(position * div_term * 0.01)    # (max_seq_len, D)
    return positional_embedding, rotation_matrix


if __name__ == "__main__":
    # --- Case 1: decode-shaped (small S) -> flattened-row path ---
    B, S, D = 2, 8, 32
    max_seq_len = 64
    pos_emb, rot = make_params(D, max_seq_len)
    x = jax.random.normal(jax.random.PRNGKey(0), (B, S, D), dtype=jnp.float32)

    out = jax.block_until_ready(
        rotary_positional_embedding(x, pos_emb, rot, compute_dtype=jnp.float32))
    ref = jnp.matmul(x + pos_emb[:S], rot)
    assert out.shape == (B, S, D) and out.dtype == x.dtype
    # Kernel computes x@R + (pos@R) instead of (x+pos)@R -> slightly different f32 rounding.
    assert jnp.allclose(out, ref, atol=1e-4, rtol=1e-4), float(jnp.max(jnp.abs(out - ref)))

    # --- Case 2: longer sequence -> (seq_block, batch) grid with de-duplicated posR ---
    B2, S2, D2 = 2, 80, 32
    pos2, rot2 = make_params(D2, 128)
    x2 = jax.random.normal(jax.random.PRNGKey(1), (B2, S2, D2), dtype=jnp.float32)
    out2 = jax.block_until_ready(
        rotary_positional_embedding(x2, pos2, rot2, compute_dtype=jnp.float32))
    ref2 = jnp.matmul(x2 + pos2[:S2], rot2)
    assert out2.shape == (B2, S2, D2) and out2.dtype == x2.dtype
    assert jnp.allclose(out2, ref2, atol=1e-4, rtol=1e-4), float(jnp.max(jnp.abs(out2 - ref2)))

    print("KERNEL_OK")
</pallas_src>

<mosaic_0001>
module attributes {stable_mosaic.version = 11 : i64} {
  func.func @rope_kernel(%arg0: i32, %arg1: memref<16x128xf32, #tpu.memory_space<vmem>>, %arg2: memref<128x128xf32, #tpu.memory_space<vmem>>, %arg3: memref<16x128xf32, #tpu.memory_space<vmem>>, %arg4: memref<16x128xf32, #tpu.memory_space<vmem>>) attributes {dimension_semantics = [#tpu.dimension_semantics<parallel>], iteration_bounds = array<i64: 1>, scalar_prefetch = 0 : i64, scratch_operands = 0 : i64, tpu.core_type = #tpu.core_type<tc>, window_params = [{transform_indices = @transform_0, window_bounds = array<i64: 16, 128>}, {pipeline_mode = #tpu.pipeline_mode<synchronous>, transform_indices = @transform_1, window_bounds = array<i64: 128, 128>}, {transform_indices = @transform_2, window_bounds = array<i64: 16, 128>}, {transform_indices = @transform_3, window_bounds = array<i64: 16, 128>}]} {
    %c0 = arith.constant 0 : index
    %c0_0 = arith.constant 0 : index
    %0 = vector.load %arg1[%c0, %c0_0] : memref<16x128xf32, #tpu.memory_space<vmem>>, vector<16x128xf32>
    %c0_1 = arith.constant 0 : index
    %c0_2 = arith.constant 0 : index
    %1 = vector.load %arg2[%c0_1, %c0_2] : memref<128x128xf32, #tpu.memory_space<vmem>>, vector<128x128xf32>
    %cst = arith.constant dense<0.000000e+00> : vector<16x128xf32>
    %2 = tpu.matmul %0, %1, %cst {dimension_numbers = #tpu.dot_dimension_numbers<[1], [0], [0], [1], [0, 0, 1, 1], [], []>} : vector<16x128xf32>, vector<128x128xf32>, vector<16x128xf32> -> vector<16x128xf32>
    %c0_3 = arith.constant 0 : index
    %c0_4 = arith.constant 0 : index
    %3 = vector.load %arg3[%c0_3, %c0_4] : memref<16x128xf32, #tpu.memory_space<vmem>>, vector<16x128xf32>
    %4 = arith.addf %2, %3 : vector<16x128xf32>
    %c0_5 = arith.constant 0 : index
    %c0_6 = arith.constant 0 : index
    %5 = vector.load %arg4[%c0_5, %c0_6] : memref<16x128xf32, #tpu.memory_space<vmem>>, vector<16x128xf32>
    tpu.vector_store %arg4[%c0_5, %c0_6], %4 {strides = array<i32>} : memref<16x128xf32, #tpu.memory_space<vmem>>, vector<16x128xf32>,
    return
  }
  func.func @transform_0(%arg0: i32) -> (i32, i32) {
    %c0_i32 = arith.constant 0 : i32
    %c0_i32_0 = arith.constant 0 : i32
    return %arg0, %c0_i32 : i32, i32
  }
  func.func @transform_1(%arg0: i32) -> (i32, i32) {
    %c0_i32 = arith.constant 0 : i32
    %c0_i32_0 = arith.constant 0 : i32
    %c0_i32_1 = arith.constant 0 : i32
    return %c0_i32, %c0_i32_0 : i32, i32
  }
  func.func @transform_2(%arg0: i32) -> (i32, i32) {
    %c0_i32 = arith.constant 0 : i32
    %c0_i32_0 = arith.constant 0 : i32
    return %arg0, %c0_i32 : i32, i32
  }
  func.func @transform_3(%arg0: i32) -> (i32, i32) {
    %c0_i32 = arith.constant 0 : i32
    %c0_i32_0 = arith.constant 0 : i32
    return %arg0, %c0_i32 : i32, i32
  }
}

</mosaic_0001>

<bundles_post_ra>
// kernel: tpu_custom_call.1
= control target key start
LH: loop header
LB: loop body
LE: loop exit
PB: predicated region body
PF: predicated region fallthrough
CT: control target
= control target key end

     0   :  { %8 = vsyncpa [#allocation3], 0  ;;  %s301_s0 = inlined_call_operand.hbm [shape: f32[16,128], index: 0, kind: input, shape index: {}]   ;;  %s302_s1 = inlined_call_operand.hbm [shape: f32[128,128], index: 1, kind: input, shape index: {}]   ;;  %s303_s2 = inlined_call_operand.hbm [shape: f32[16,128], index: 2, kind: input, shape index: {}]   ;;  %s304_s3 = inlined_call_operand.hbm [shape: f32[16,128], index: 3, kind: output, shape index: {}]  }
   0x1   :  { %9 = vsyncpa [#allocation6], 0 }
   0x2   :  { %10 = vsyncpa [#allocation4], 0  ;;  %s28_s14 = sshll.u32 %s302_s1, 4  ;;  %s251_s15 = smov [#allocation5]   ;;  %s29_s14 = int_to_ptr.hbm [resolvable:$true] %s28_s14 }
   0x3   :  { %s30_s16 = sshll.u32 %s251_s15, 4  ;;  %s15_s19 = sshll.u32 %s301_s0, 4  ;;  %s31_s16 = int_to_ptr.vmem [resolvable:$true] %s30_s16  ;;  %s16_s19 = int_to_ptr.hbm [resolvable:$true] %s15_s19 }
   0x4   :  { %s252_s20 = smov 128   ;;  %s253_s21 = smov 8  }
   0x5   :  { %36 = dma.hbm_to_vmem [thread:$0]  %s29_s14, 2048, %s31_s16, [#allocation6], %s252_s20, %s252_s20, %s253_s21  }
   0x6   :  { %s254_s22 = smov [#allocation2]   ;;  %s41_s1 = sshll.u32 %s303_s2, 4  ;;  %s42_s1 = int_to_ptr.hbm [resolvable:$true] %s41_s1 }
   0x7   :  { %s17_s23 = sshll.u32 %s254_s22, 4  ;;  %s255_s0 = smov [#allocation7]   ;;  %s18_s23 = int_to_ptr.vmem [resolvable:$true] %s17_s23 }
   0x8   :  { %23 = dma.hbm_to_vmem [thread:$0]  %s16_s19, 256, %s18_s23, [#allocation3], %s252_s20, %s252_s20, %s253_s21  }
   0x9   :  { %s43_s26 = sshll.u32 %s255_s0, 4  ;;  %s44_s26 = int_to_ptr.vmem [resolvable:$true] %s43_s26 }
   0xa   :  { %49 = dma.hbm_to_vmem [thread:$0]  %s42_s1, 256, %s44_s26, [#allocation6], %s252_s20, %s252_s20, %s253_s21  }
   0xb   :  { %245 = dma.done.wait [#allocation3], 256  }
   0xc   :  { %246 = vsyncadd [#allocation3], 4294967040 }
   0xd   :  { %247 = dma.done.wait [#allocation6], 2304  }
   0xe   :  { %248 = vsyncadd [#allocation6], 4294964992  ;;  %v79_v0 = vld [vmem:[#allocation5 + $0x78] sm:$0xff]  ;;  %v78_v1 = vld [vmem:[#allocation5 + $0x70] sm:$0xff]  ;;  %s256_s2 = smov [#allocation8]   ;;  %s113_s30 = sshll.u32 %s304_s3, 4  ;;  %s114_s30 = int_to_ptr.hbm [resolvable:$true] %s113_s30 }
   0xf   :  { %82 = vmatpush.msra.mxu0 %v79_v0  ;;  %127 = vmatpush.msra.mxu1 %v79_v0  ;;  %v77_v2 = vld [vmem:[#allocation5 + $0x68] sm:$0xff]  ;;  %v76_v3 = vld [vmem:[#allocation5 + $0x60] sm:$0xff]  ;;  %v75_v4 = vld [vmem:[#allocation5 + $0x58] sm:$0xff]  ;;  %s111_s27 = sshll.u32 %s256_s2, 4  ;;  %s112_s27 = int_to_ptr.vmem [resolvable:$true] %s111_s27 }
  0x10   :  { %v74_v5 = vld [vmem:[#allocation5 + $0x50] sm:$0xff]  ;;  %v73_v6 = vld [vmem:[#allocation5 + $0x48] sm:$0xff]  ;;  %v72_v7 = vld [vmem:[#allocation5 + $0x40] sm:$0xff] }
  0x11   :  { %83 = vmatpush.msra.mxu0 %v78_v1  ;;  %128 = vmatpush.msra.mxu1 %v78_v1  ;;  %v71_v8 = vld [vmem:[#allocation5 + $0x38] sm:$0xff]  ;;  %v70_v9 = vld [vmem:[#allocation5 + $0x30] sm:$0xff]  ;;  %v69_v10 = vld [vmem:[#allocation5 + $0x28] sm:$0xff] }
  0x12   :  { %v68_v11 = vld [vmem:[#allocation5 + $0x20] sm:$0xff]  ;;  %v67_v12 = vld [vmem:[#allocation5 + $0x18] sm:$0xff]  ;;  %v66_v13 = vld [vmem:[#allocation5 + $0x10] sm:$0xff] }
  0x13   :  { %84 = vmatpush.msra.mxu0 %v77_v2  ;;  %129 = vmatpush.msra.mxu1 %v77_v2  ;;  %v65_v14 = vld [vmem:[#allocation5 + $0x8] sm:$0xff]  ;;  %v64_v15 = vld [vmem:[#allocation5] sm:$0xff]  ;;  %v62_v16 = vld [vmem:[#allocation2] sm:$0xff] }
  0x14   :  { %v63_v17 = vld [vmem:[#allocation2 + $0x8] sm:$0xff]  ;;  %v80_v18 = vld [vmem:[#allocation7] sm:$0xff]  ;;  %v81_v19 = vld [vmem:[#allocation7 + $0x8] sm:$0xff] }
  0x15   :  { %85 = vmatpush.msra.mxu0 %v76_v3  ;;  %130 = vmatpush.msra.mxu1 %v76_v3 }
  0x17   :  { %86 = vmatpush.msra.mxu0 %v75_v4  ;;  %131 = vmatpush.msra.mxu1 %v75_v4 }
  0x19   :  { %87 = vmatpush.msra.mxu0 %v74_v5  ;;  %132 = vmatpush.msra.mxu1 %v74_v5 }
  0x1b   :  { %88 = vmatpush.msra.mxu0 %v73_v6  ;;  %133 = vmatpush.msra.mxu1 %v73_v6 }
  0x1d   :  { %89 = vmatpush.msra.mxu0 %v72_v7  ;;  %134 = vmatpush.msra.mxu1 %v72_v7 }
  0x1f   :  { %90 = vmatpush.msra.mxu0 %v71_v8  ;;  %135 = vmatpush.msra.mxu1 %v71_v8 }
  0x21   :  { %91 = vmatpush.msra.mxu0 %v70_v9  ;;  %136 = vmatpush.msra.mxu1 %v70_v9 }
  0x23   :  { %92 = vmatpush.msra.mxu0 %v69_v10  ;;  %137 = vmatpush.msra.mxu1 %v69_v10 }
  0x25   :  { %93 = vmatpush.msra.mxu0 %v68_v11  ;;  %138 = vmatpush.msra.mxu1 %v68_v11 }
  0x27   :  { %94 = vmatpush.msra.mxu0 %v67_v12  ;;  %139 = vmatpush.msra.mxu1 %v67_v12 }
  0x29   :  { %95 = vmatpush.msra.mxu0 %v66_v13  ;;  %140 = vmatpush.msra.mxu1 %v66_v13 }
  0x2b   :  { %96 = vmatpush.msra.mxu0 %v65_v14  ;;  %141 = vmatpush.msra.mxu1 %v65_v14 }
  0x2d   :  { %97 = vmatpush.msra.mxu0 %v64_v15  ;;  %142 = vmatpush.msra.mxu1 %v64_v15 }
  0x2e   :  { %98 = vmatmul.f32.vlgmr.msra.gmra.mxu0 %v62_v16  ;;  %101 = vmatmul.f32.vlgmr.msra.gmra.mxu1 %v63_v17 }
  0xab   :  { %v99_v20 = vpop.f32.mrf.mxu0  ;;  %v102_v21 = vpop.f32.mrf.mxu1 }
  0xac   :  { %v100_v22 = vadd.f32 %v99_v20, %v80_v18  ;;  %v103_v23 = vadd.f32 %v102_v21, %v81_v19 }
  0xae   :  { %105 = vst [vmem:[#allocation8] sm:$0xff] %v100_v22 }
  0xaf   :  { %106 = vst [vmem:[#allocation8 + $0x8] sm:$0xff] %v103_v23 }
  0xb0   :  { %119 = dma.vmem_to_hbm [thread:$0]  %s112_s27, 256, %s114_s30, [#allocation4], %s252_s20, %s252_s20, %s253_s21  }
  0xb1   :  { %249 = dma.done.wait [#allocation4], 256  }
  0xb2   :  { %250 = vsyncadd [#allocation4], 4294967040 }
  0xb3   :  { %124 = vsyncpa [#allocation3], 1 }
  0xb4   :  { %125 = vsyncpa [#allocation6], 1 }
  0xb5   :  { %126 = vsyncpa [#allocation4], 1 }

</bundles_post_ra>
